<compile_context>
chip_gen: v7x
topology: tpu7x:2x2x1
jax: 0.10.0
libtpu: 0.0.40
codegen_flags: <defaults>
</compile_context>

<pallas_src>
import jax
import jax.numpy as jnp
from jax.experimental import pallas as pl
from jax.experimental.pallas import tpu as pltpu

# Only bother splitting the copy into multiple DMA descriptors when the
# array is big enough for the extra descriptors to pay off.
_CHUNK_BYTES_THRESHOLD = 1 * 1024 * 1024
_MAX_CHUNKS = 4


def _chunk_leading_axis(leading, total_bytes):
    """Static (start, size) chunks along axis 0 (contiguous major slices)."""
    if total_bytes < _CHUNK_BYTES_THRESHOLD or leading < 2:
        return [(0, leading)]
    n = min(leading, _MAX_CHUNKS)
    base = leading // n
    rem = leading % n
    chunks = []
    start = 0
    for i in range(n):
        size = base + (1 if i < rem else 0)
        chunks.append((start, size))
        start += size
    return chunks


def _hbm_identity_copy(x):
    """Copies `x` to a fresh buffer with direct HBM->HBM DMA (no VMEM)."""
    chunks = _chunk_leading_axis(x.shape[0], x.size * x.dtype.itemsize)
    n_chunks = len(chunks)

    def kernel(x_hbm, o_hbm, sem):
        if n_chunks == 1:
            cp = pltpu.make_async_copy(x_hbm, o_hbm, sem.at[0])
            cp.start()
            cp.wait()
        else:
            copies = []
            for idx, (start, size) in enumerate(chunks):
                cp = pltpu.make_async_copy(
                    x_hbm.at[pl.ds(start, size)],
                    o_hbm.at[pl.ds(start, size)],
                    sem.at[idx],
                )
                cp.start()
                copies.append(cp)
            for cp in copies:  # all DMAs in flight before any wait
                cp.wait()

    return pl.pallas_call(
        kernel,
        out_shape=jax.ShapeDtypeStruct(x.shape, x.dtype),
        in_specs=[pl.BlockSpec(memory_space=pl.ANY)],
        out_specs=pl.BlockSpec(memory_space=pl.ANY),
        scratch_shapes=[pltpu.SemaphoreType.DMA((n_chunks,))],
    )(x)


class PallasModel:
    """JAX/Pallas mirror of the abstract PyTorch `Model` base class."""

    def __init__(self):
        # The PyTorch __init__ registers no parameters; nothing to initialize.
        pass

    def forward(self, x, **kwargs):
        # PyTorch forward body is `pass` -> returns None.
        return None

    def reset(self, x, **kwargs):
        # Semantics: return x unchanged.  Implemented as one (or a few)
        # direct HBM->HBM DMA(s) in a Pallas kernel — no VMEM staging, no
        # wrapper-side pad / reshape / slice, no shape or dtype constraints.
        x = jnp.asarray(x)
        if x.ndim == 0:
            return _hbm_identity_copy(x.reshape(1)).reshape(())
        return _hbm_identity_copy(x)

    def sample(self, x, deterministic: bool = False, **kwargs):
        # Base class does `return (self.forward(x)[0],)`, which is undefined
        # there because forward returns None.  Documented behavioral
        # deviation: route through the reset identity path instead.
        return (self.reset(x)[0],)

    def __len__(self):
        return 1

    # TODO(synk): loss/update/save/load (abstract / optimizer / file-I/O)
    #             have no Pallas equivalent.


if __name__ == "__main__":
    key = jax.random.PRNGKey(0)
    # Small NCHW input consistent with a conv-style env network.
    x = jax.random.normal(key, (2, 4, 16, 16), dtype=jnp.float32)

    model = PallasModel()

    # forward() matches the abstract base class exactly: returns None.
    assert model.forward(x) is None

    # Concrete tensor path (identity / reset): single HBM->HBM DMA.
    y = jax.block_until_ready(model.reset(x))
    assert y.shape == x.shape and y.dtype == x.dtype
    assert bool(jnp.array_equal(y, x))

    # Odd-shaped input: no alignment/padding work needed anywhere.
    x2 = jax.random.normal(jax.random.PRNGKey(1), (3, 5, 7), dtype=jnp.float32)
    y2 = jax.block_until_ready(model.reset(x2))
    assert y2.shape == x2.shape and y2.dtype == x2.dtype
    assert bool(jnp.array_equal(y2, x2))

    # 1 MiB input exercises the multi-descriptor (chunked) DMA path.
    x3 = jax.random.normal(jax.random.PRNGKey(2), (256, 32, 32),
                           dtype=jnp.float32)
    y3 = jax.block_until_ready(model.reset(x3))
    assert y3.shape == x3.shape and y3.dtype == x3.dtype
    assert bool(jnp.array_equal(y3, x3))

    print("KERNEL_OK")
</pallas_src>

<mosaic_0001>
module attributes {stable_mosaic.version = 11 : i64} {
  func.func @kernel(%arg0: memref<2x4x16x16xf32, #tpu.memory_space<any>>, %arg1: memref<2x4x16x16xf32, #tpu.memory_space<any>>, %arg2: memref<1x!tpu.dma_semaphore, #tpu.memory_space<semaphore_mem>>) attributes {dimension_semantics = [], scalar_prefetch = 0 : i64, scratch_operands = 1 : i64, tpu.core_type = #tpu.core_type<tc>} {
    %c0_i32 = arith.constant 0 : i32
    %0 = tpu.memref_slice %arg2[%c0_i32] : memref<1x!tpu.dma_semaphore, #tpu.memory_space<semaphore_mem>> -> memref<1x!tpu.dma_semaphore, #tpu.memory_space<semaphore_mem>>
    %1 = tpu.memref_squeeze %0 : memref<1x!tpu.dma_semaphore, #tpu.memory_space<semaphore_mem>> -> memref<!tpu.dma_semaphore, #tpu.memory_space<semaphore_mem>>
    tpu.enqueue_dma source(%arg0 : memref<2x4x16x16xf32, #tpu.memory_space<any>>) target(%arg1 : memref<2x4x16x16xf32, #tpu.memory_space<any>>) target_semaphore(%1 : memref<!tpu.dma_semaphore, #tpu.memory_space<semaphore_mem>>)
    %c0_i32_0 = arith.constant 0 : i32
    %2 = tpu.memref_slice %arg2[%c0_i32_0] : memref<1x!tpu.dma_semaphore, #tpu.memory_space<semaphore_mem>> -> memref<1x!tpu.dma_semaphore, #tpu.memory_space<semaphore_mem>>
    %3 = tpu.memref_squeeze %2 : memref<1x!tpu.dma_semaphore, #tpu.memory_space<semaphore_mem>> -> memref<!tpu.dma_semaphore, #tpu.memory_space<semaphore_mem>>
    tpu.wait_dma2 semaphore(%3 : memref<!tpu.dma_semaphore, #tpu.memory_space<semaphore_mem>>) src(%arg0 : memref<2x4x16x16xf32, #tpu.memory_space<any>>) dst(%arg1 : memref<2x4x16x16xf32, #tpu.memory_space<any>>)
    return
  }
}

</mosaic_0001>

<bundles_post_ra>
// kernel: tpu_custom_call.1
= control target key start
LH: loop header
LB: loop body
LE: loop exit
PB: predicated region body
PF: predicated region fallthrough
CT: control target
= control target key end

     0   :  { %s36_s6 = smov [#allocation2]   ;;  %s37_s7 = smov [#allocation3]   ;;  %s55_s0 = inlined_call_operand.hbm [shape: f32[2,4,16,16], index: 0, kind: input, shape index: {}]   ;;  %s56_s1 = inlined_call_operand.hbm [shape: f32[2,4,16,16], index: 1, kind: output, shape index: {}]  }
   0x1   :  { %s38_s8 = smov 0  }
   0x2   :  { %18 = dma.general %s55_s0, 2048, %s56_s1, %s36_s6, %s37_s7, [#allocation4], %s38_s8, 0  }
   0x3   :  { %34 = dma.done.wait [#allocation2], 2048 }
   0x4   :  { %35 = vsyncadd [#allocation2], 4294965248 }
   0x5   :  { %24 = vsyncmov [#allocation2] }
   0x8   :  { %s25_s13 = vpop.sfrf %24 }
   0x9   :  { %p30_p0 = scmp.ne.s32.totalorder %s25_s13, 0 }
   0xb   :  { %29 = shalt.err (%p30_p0)  }

</bundles_post_ra>
